<compile_context>
chip_gen: v5e
topology: v5e:2x2
jax: 0.10.0
libtpu: 0.0.40
codegen_flags: <defaults>
</compile_context>

<pallas_src>
import functools

import jax
import jax.numpy as jnp
from jax import lax
from jax.experimental import pallas as pl
from jax.experimental.pallas import tpu as pltpu

LANE = 128        # lane width (minor dim of the streamed slab)
SUBLANE = 8       # f32 sublane tile
NUM_PARTIALS = 2  # leading "parallel" grid axis: one partial per TensorCore on v7x


def _default_max_block_rows():
    """Rows per block: 8192 (4 MiB f32/input block) on v6e/v7x, 4096 elsewhere."""
    try:
        kind = jax.devices()[0].device_kind.lower()
    except Exception:
        return 4096
    if "v6" in kind or "v7" in kind:
        return 8192
    return 4096  # v5e-safe: fits the 16 MiB default scoped VMEM when double-buffered


def _make_kld_kernel(block_rows, nb, k_steps, last_valid_rows):
    """Build a kernel closed over the static tiling parameters (n is static)."""
    mask_last = last_valid_rows < block_rows     # final Pallas block is ragged
    padded_grid = NUM_PARTIALS * k_steps > nb    # some (c, k) slots carry no block

    def _accumulate(yp_ref, yt_ref, acc_ref, masked):
        yp = yp_ref[...].astype(jnp.float32)     # f32 cast in-register
        yt = yt_ref[...].astype(jnp.float32)
        # -y_true * log(y_pred / y_true) == y_true * (log(y_true) - log(y_pred)).
        # Two EUP logs, no f32 divide -> VALU slots stay free (matters on v7x).
        loss = yt * (jnp.log(yt) - jnp.log(yp))
        if masked:
            # Row-level mask, only for the single ragged final block.  Keep it
            # a select (jnp.where): the out-of-bounds rows hold log() of
            # garbage (possibly inf/NaN) that a `loss * mask` would propagate.
            rid = lax.broadcasted_iota(jnp.int32, (block_rows, LANE), 0)
            loss = jnp.where(rid < last_valid_rows, loss, 0.0)
        # Fold (block_rows, 128) -> (8, 128) with pure vreg-wise VPU adds; the
        # expensive cross-lane/sublane reduce happens once, in the wrapper.
        acc_ref[...] += loss.reshape(block_rows // SUBLANE, SUBLANE, LANE).sum(axis=0)

    def kernel(yp_ref, yt_ref, acc_ref):
        c = pl.program_id(0)             # partial index ("parallel", one per core)
        k = pl.program_id(1)             # block index within partial ("arbitrary")
        b = c * k_steps + k              # global row-block index

        # acc_ref is this partial's (8,128) output block, resident across k.
        @pl.when(k == 0)
        def _():
            acc_ref[...] = jnp.zeros_like(acc_ref)

        if mask_last:
            @pl.when(b < nb - 1)
            def _():
                _accumulate(yp_ref, yt_ref, acc_ref, masked=False)

            @pl.when(b == nb - 1)
            def _():
                _accumulate(yp_ref, yt_ref, acc_ref, masked=True)
            # b >= nb (padded grid slot): contributes nothing.
        elif padded_grid:
            @pl.when(b < nb)
            def _():
                _accumulate(yp_ref, yt_ref, acc_ref, masked=False)
        else:
            _accumulate(yp_ref, yt_ref, acc_ref, masked=False)

    return kernel


@functools.partial(jax.jit, static_argnames=("max_block_rows",))
def kld_loss(y_pred, y_true, max_block_rows=None):
    assert y_pred.shape == y_true.shape
    n = y_pred.size                          # Python int (static under jit)
    if max_block_rows is None:
        max_block_rows = _default_max_block_rows()
    max_block_rows = max(SUBLANE, (max_block_rows // SUBLANE) * SUBLANE)

    yp = jnp.ravel(y_pred)                   # free bitcast; keep native dtype
    yt = jnp.ravel(y_true)

    # Kernel covers the largest prefix whose row count is a multiple of the
    # sublane tile; the small remainder is summed with plain jnp (no pad/copy).
    rows = ((n // LANE) // SUBLANE) * SUBLANE
    main = rows * LANE

    if main < n:
        ypt = yp[main:].astype(jnp.float32)
        ytt = yt[main:].astype(jnp.float32)
        tail_sum = jnp.sum(ytt * (jnp.log(ytt) - jnp.log(ypt)))
    else:
        tail_sum = None

    if rows == 0:                            # input smaller than one (8,128) tile
        return tail_sum if tail_sum is not None else jnp.zeros((), jnp.float32)

    yp2 = yp[:main].reshape(rows, LANE)      # reshape only (slice only if ragged)
    yt2 = yt[:main].reshape(rows, LANE)

    block_rows = min(rows, max_block_rows)             # always a multiple of 8
    nb = -(-rows // block_rows)                        # number of row blocks
    last_valid_rows = rows - (nb - 1) * block_rows     # rows in the final block
    k_steps = -(-nb // NUM_PARTIALS)                   # blocks per partial

    if NUM_PARTIALS * k_steps == nb:
        in_idx = lambda c, k: (c * k_steps + k, 0)
    else:
        # Clamp padded grid slots to the last real block (kernel skips them),
        # so the DMA never reads past the array.
        in_idx = lambda c, k: (jnp.minimum(c * k_steps + k, nb - 1), 0)

    kernel = _make_kld_kernel(block_rows, nb, k_steps, last_valid_rows)

    partials = pl.pallas_call(
        kernel,
        out_shape=jax.ShapeDtypeStruct((NUM_PARTIALS * SUBLANE, LANE), jnp.float32),
        grid_spec=pltpu.PrefetchScalarGridSpec(
            num_scalar_prefetch=0,
            grid=(NUM_PARTIALS, k_steps),
            in_specs=[
                pl.BlockSpec((block_rows, LANE), in_idx),
                pl.BlockSpec((block_rows, LANE), in_idx),
            ],
            out_specs=pl.BlockSpec((SUBLANE, LANE), lambda c, k: (c, 0)),
        ),
        compiler_params=pltpu.CompilerParams(
            dimension_semantics=("parallel", "arbitrary")),
    )(yp2, yt2)

    total = jnp.sum(partials)                # single small reduce, outside the hot loop
    if tail_sum is not None:
        total = total + tail_sum
    return total


def kld_loss_ref(y_pred, y_true):
    yp = y_pred.astype(jnp.float32)
    yt = y_true.astype(jnp.float32)
    return jnp.sum(-yt * jnp.log(yp / yt))


if __name__ == "__main__":
    key = jax.random.PRNGKey(0)
    k1, k2, k3, k4 = jax.random.split(key, 4)

    # NCHW-like feature map; values strictly positive (log of ratio).
    shape = (2, 4, 16, 16)                   # 2048 elements -> aligned kernel path
    y_pred = jax.random.uniform(k1, shape, jnp.float32, minval=0.1, maxval=1.0)
    y_true = jax.random.uniform(k2, shape, jnp.float32, minval=0.1, maxval=1.0)

    out = jax.block_until_ready(kld_loss(y_pred, y_true))
    ref = kld_loss_ref(y_pred, y_true)
    assert jnp.allclose(out, ref, rtol=1e-5, atol=1e-4), (out, ref)

    # Ragged size + tiny block override to exercise the multi-block path,
    # ragged final Pallas block, padded grid slots and the jnp tail.
    shape2 = (5305,)                         # 40 full kernel rows + 185-element tail
    y_pred2 = jax.random.uniform(k3, shape2, jnp.float32, minval=0.1, maxval=1.0)
    y_true2 = jax.random.uniform(k4, shape2, jnp.float32, minval=0.1, maxval=1.0)

    out2 = jax.block_until_ready(kld_loss(y_pred2, y_true2, max_block_rows=16))
    ref2 = kld_loss_ref(y_pred2, y_true2)
    assert jnp.allclose(out2, ref2, rtol=1e-5, atol=1e-4), (out2, ref2)

    print("KERNEL_OK")
</pallas_src>

<mosaic_0001>
module attributes {stable_mosaic.version = 11 : i64} {
  func.func @kernel(%arg0: i32, %arg1: i32, %arg2: memref<16x128xf32, #tpu.memory_space<vmem>>, %arg3: memref<16x128xf32, #tpu.memory_space<vmem>>, %arg4: memref<8x128xf32, #tpu.memory_space<vmem>>) attributes {dimension_semantics = [#tpu.dimension_semantics<parallel>, #tpu.dimension_semantics<arbitrary>], iteration_bounds = array<i64: 2, 1>, scalar_prefetch = 0 : i64, scratch_operands = 0 : i64, tpu.core_type = #tpu.core_type<tc>, window_params = [{transform_indices = @transform_0, window_bounds = array<i64: 16, 128>}, {transform_indices = @transform_1, window_bounds = array<i64: 16, 128>}, {transform_indices = @transform_2, window_bounds = array<i64: 8, 128>}]} {
    %c1_i32 = arith.constant 1 : i32
    %0 = arith.muli %arg0, %c1_i32 : i32
    %1 = arith.addi %0, %arg1 : i32
    %c0_i32 = arith.constant 0 : i32
    %2 = arith.cmpi eq, %arg1, %c0_i32 : i32
    %3 = arith.extui %2 : i1 to i32
    %c0_i32_0 = arith.constant 0 : i32
    %4 = arith.cmpi ne, %3, %c0_i32_0 : i32
    scf.if %4 {
      %cst = arith.constant 0.000000e+00 : f32
      %8 = vector.broadcast %cst : f32 to vector<8x128xf32>
      %c0 = arith.constant 0 : index
      %c0_3 = arith.constant 0 : index
      %9 = vector.load %arg4[%c0, %c0_3] : memref<8x128xf32, #tpu.memory_space<vmem>>, vector<8x128xf32>
      tpu.vector_store %arg4[%c0, %c0_3], %8 {strides = array<i32>} : memref<8x128xf32, #tpu.memory_space<vmem>>, vector<8x128xf32>,
    } else {
    }
    %c1_i32_1 = arith.constant 1 : i32
    %5 = arith.cmpi slt, %1, %c1_i32_1 : i32
    %6 = arith.extui %5 : i1 to i32
    %c0_i32_2 = arith.constant 0 : i32
    %7 = arith.cmpi ne, %6, %c0_i32_2 : i32
    scf.if %7 {
      %c0 = arith.constant 0 : index
      %c0_3 = arith.constant 0 : index
      %8 = vector.load %arg2[%c0, %c0_3] : memref<16x128xf32, #tpu.memory_space<vmem>>, vector<16x128xf32>
      %c0_4 = arith.constant 0 : index
      %c0_5 = arith.constant 0 : index
      %9 = vector.load %arg3[%c0_4, %c0_5] : memref<16x128xf32, #tpu.memory_space<vmem>>, vector<16x128xf32>
      %10 = math.log %9 : vector<16x128xf32>
      %11 = math.log %8 : vector<16x128xf32>
      %12 = arith.subf %10, %11 : vector<16x128xf32>
      %13 = arith.mulf %9, %12 : vector<16x128xf32>
      %c0_6 = arith.constant 0 : index
      %c0_7 = arith.constant 0 : index
      %14 = vector.load %arg4[%c0_6, %c0_7] : memref<8x128xf32, #tpu.memory_space<vmem>>, vector<8x128xf32>
      %15 = vector.shape_cast %13 : vector<16x128xf32> to vector<2x8x128xf32>
      %cst = arith.constant dense<0.000000e+00> : vector<8x128xf32>
      %16 = vector.multi_reduction <add>, %15, %cst [0] : vector<2x8x128xf32> to vector<8x128xf32>
      %17 = arith.addf %14, %16 : vector<8x128xf32>
      %c0_8 = arith.constant 0 : index
      %c0_9 = arith.constant 0 : index
      %18 = vector.load %arg4[%c0_8, %c0_9] : memref<8x128xf32, #tpu.memory_space<vmem>>, vector<8x128xf32>
      tpu.vector_store %arg4[%c0_8, %c0_9], %17 {strides = array<i32>} : memref<8x128xf32, #tpu.memory_space<vmem>>, vector<8x128xf32>,
    } else {
    }
    return
  }
  func.func @transform_0(%arg0: i32, %arg1: i32) -> (i32, i32) {
    %c1_i32 = arith.constant 1 : i32
    %0 = arith.muli %arg0, %c1_i32 : i32
    %1 = arith.addi %0, %arg1 : i32
    %c0_i32 = arith.constant 0 : i32
    %2 = arith.minsi %1, %c0_i32 : i32
    %c0_i32_0 = arith.constant 0 : i32
    %c0_i32_1 = arith.constant 0 : i32
    return %2, %c0_i32_0 : i32, i32
  }
  func.func @transform_1(%arg0: i32, %arg1: i32) -> (i32, i32) {
    %c1_i32 = arith.constant 1 : i32
    %0 = arith.muli %arg0, %c1_i32 : i32
    %1 = arith.addi %0, %arg1 : i32
    %c0_i32 = arith.constant 0 : i32
    %2 = arith.minsi %1, %c0_i32 : i32
    %c0_i32_0 = arith.constant 0 : i32
    %c0_i32_1 = arith.constant 0 : i32
    return %2, %c0_i32_0 : i32, i32
  }
  func.func @transform_2(%arg0: i32, %arg1: i32) -> (i32, i32) {
    %c0_i32 = arith.constant 0 : i32
    %c0_i32_0 = arith.constant 0 : i32
    return %arg0, %c0_i32 : i32, i32
  }
}

</mosaic_0001>

<bundles_post_ra>
// kernel: kld_loss.1
= control target key start
LH: loop header
LB: loop body
LE: loop exit
PB: predicated region body
PF: predicated region fallthrough
CT: control target
= control target key end

     0   :  { %s409_s9 = smov 0   ;;  %s411_s10 = smov 0   ;;  %s450_s0 = inlined_call_operand.vmem [shape: f32[16,128], index: 0, kind: input, shape index: {}]   ;;  %s451_s1 = inlined_call_operand.vmem [shape: f32[16,128], index: 1, kind: input, shape index: {}]   ;;  %s452_s2 = inlined_call_operand.vmem [shape: f32[16,128], index: 2, kind: output, shape index: {}]  }
   0x1   :  { %s413_s11 = smov 0  }
   0x2 LB: > { %s24_s12 = sadd.s32 1, %s387_s10  ;;  %p327_p0 = scmp.ge.s32.totalorder %s391_s11, 1  ;;  %s391_s11 = sphi %s413_s11, %s12_s11   ;;  %s387_s10 = sphi %s411_s10, %s454_s10   ;;  %s383_s9 = sphi %s409_s9, %s453_s9  }
   0x3   : > { %p26_p1 = scmp.ge.s32.totalorder %s24_s12, 2  ;;  %p160_p2 = scmp.lt.s32.totalorder %s391_s11, 3 }
   0x5   : > { %s456_s12 = smov (%p26_p1, %s24_s12), 0  ;;  %p161_p3 = pnand %p327_p0, %p160_p2 }
   0x6   : > { %p193_p4 = scmp.lt.s32.totalorder (!%p161_p3), %s383_s9, 0  ;;  %p216_p5 = scmp.lt.s32.totalorder (!%p161_p3), %s383_s9, 1 }
   0x7   : > { %164 = sbr.rel (%p161_p3) target bundleno = 44 (0x2c), region = 28  ;;  %p333_p7 = scmp.ge.s32.totalorder (!%p161_p3), %s383_s9, 1 }
   0xc   : > { %s194_s13 = scalar_select %p193_p4, %s383_s9, 0  ;;  %v393_v0 = vmov 0.0  }
   0xd   : > { %s217_s14 = scalar_select %p216_p5, %s383_s9, 1 }
   0xe   : > { %s328_s15 = sshll.u32 %s194_s13, 1 }
   0xf   : > { %p196_p6 = scmp.lt.s32.totalorder %s328_s15, 1  ;;  %s332_s16 = sshll.u32 %s217_s14, 3 }
  0x10   : > { %s430_s19 = scalar_lea.vmem %s452_s2, %s332_s16  ;;  %229 = sbr.rel (%p333_p7) target bundleno = 44 (0x2c), region = 36 }
  0x11   : > { %s458_s15 = smov (!%p196_p6, %s328_s15), 1  ;;  %225 = vst [vmem:[%s430_s19] sm:$0xff] %v393_v0 }
  0x12   : > { %s329_s20 = sshll.u32 %s458_s15, 3 }
  0x13   : > { %s199_s23 = scalar_lea.vmem %s450_s0, %s329_s20  ;;  %s211_s26 = scalar_lea.vmem %s451_s1, %s329_s20 }
  0x15   : > { %v230_v1 = vld [vmem:[%s199_s23] sm:$0xff]  ;;  %v231_v3 = vld [vmem:[%s199_s23 + $0x8] sm:$0xff] }
  0x16   : > { %v232_v2 = vld [vmem:[%s211_s26] sm:$0xff]  ;;  %v233_v4 = vld [vmem:[%s211_s26 + $0x8] sm:$0xff] }
  0x17   : > { %361 = vlog2.f32 %v232_v2 }
  0x18   : > { %363 = vlog2.f32 %v233_v4  ;;  %v246_v17 = vld [vmem:[%s430_s19] sm:$0xff] }
  0x19   : > { %365 = vlog2.f32 %v230_v1 }
  0x1a   : > { %367 = vlog2.f32 %v231_v3 }
  0x1d   : > { %v362_v5 = vpop.eup %361 }
  0x1e   : > { %v364_v6 = vpop.eup %363  ;;  %v235_v7 = vmul.f32 0.6931472, %v362_v5 }
  0x1f   : > { %v366_v8 = vpop.eup %365  ;;  %v237_v9 = vmul.f32 0.6931472, %v364_v6 }
  0x20   : > { %v368_v10 = vpop.eup %367  ;;  %v239_v11 = vmul.f32 0.6931472, %v366_v8 }
  0x21   : > { %v241_v12 = vmul.f32 0.6931472, %v368_v10 }
  0x22   : > { %v242_v13 = vsub.f32 %v235_v7, %v239_v11 }
  0x23   : > { %v243_v14 = vsub.f32 %v237_v9, %v241_v12 }
  0x24   : > { %v244_v15 = vmul.f32 %v242_v13, %v232_v2 }
  0x25   : > { %v245_v16 = vmul.f32 %v243_v14, %v233_v4 }
  0x27   : > { %v247_v18 = vadd.f32 %v245_v16, %v244_v15 }
  0x29   : > { %v248_v19 = vadd.f32 %v247_v18, %v246_v17 }
  0x2b   : > { %249 = vst [vmem:[%s430_s19] sm:$0xff] %v248_v19 }
  0x2c PF: > { %s12_s11 = sadd.s32 1, %s391_s11   ;;  %s453_s9 = smov %s387_s10 }
  0x2d   : > { %p9_p8 = scmp.ge.s32.totalorder %s12_s11, 4   ;;  %s454_s10 = smov %s456_s12 }
  0x2f   :  { %11 = sbr.rel (!%p9_p8) target bundleno = 2 (0x2), region = 69 }

</bundles_post_ra>
